<compile_context>
chip_gen: v5e
topology: v5e:2x2
jax: 0.10.0
libtpu: 0.0.40
codegen_flags: <defaults>
</compile_context>

<pallas_src>
import functools
import math

import jax
import jax.numpy as jnp
from jax import lax
from jax.experimental import pallas as pl
from jax.experimental.pallas import tpu as pltpu

_LANE = 128


def _rup(x, m):
    return (x + m - 1) // m * m


def _deepr_kernel(x_ref, w_ref, b_ref, o_ref, *,
                  kernel_size, hidden_size, hidden_pad, feat_in,
                  t_in, t_out, tb, has_mask):
    K, H, Hp = kernel_size, hidden_size, hidden_pad
    n = tb * t_in

    xt = x_ref[...]                                   # (TB, T, F_in) compute dtype
    if has_mask:
        # Mask travels as column 0 of the x tile (no separate lane-padded
        # (TB, T, 1) mask input).  (TB, T, F_in) * (TB, T, 1): lane broadcast.
        m = x_ref[:, :, 0:1]
        xt = xt * m

    # Tall MXU LHS; free sublane merge (T % 8 == 0; T % 16 keeps bf16 free).
    x2 = xt.reshape(n, feat_in)

    # ONE fused matmul for all K taps: (N, F_in) x (F_in, Hp) -> (N, Hp) f32.
    # Tap k owns lanes [k*H, k*H + H); weight row 0 is zero and cancels the
    # mask column of x2.
    y = jnp.dot(x2, w_ref[...], preferred_element_type=jnp.float32)

    # Valid conv: acc[t, 0:H] = sum_k y[t + k, k*H : k*H + H].
    # Time shift (+k, sublanes) and slab alignment (-k*H, lanes) are both
    # pltpu.roll (XLU slot, off the MXU/VPU critical path).  Lanes >= H hold
    # garbage mixtures and are dropped in the wrapper.
    acc = y
    for k in range(1, K):
        shifted = pltpu.roll(y, n - k, axis=0)          # row t <- row t + k
        shifted = pltpu.roll(shifted, Hp - k * H, axis=1)  # lane c <- lane c + k*H
        acc = acc + shifted

    acc = acc + b_ref[...]            # (N, Hp) + (1, Hp) bias (only lanes < H used)
    acc = jnp.maximum(acc, 0.0)       # relu

    # Rows t >= t_out of each batch element contain wrapped / cross-row
    # contributions; zero them.  Relu output is >= 0, so zero-masking cannot
    # change the valid per-row max (t_out >= 1).  Loop-invariant (1, T, 1) iota.
    acc = acc.reshape(tb, t_in, Hp)
    t_idx = lax.broadcasted_iota(jnp.int32, (1, t_in, 1), 1)
    acc = jnp.where(t_idx < t_out, acc, 0.0)
    o_ref[...] = jnp.max(acc, axis=1).astype(o_ref.dtype)   # (TB, Hp), lane dense


def _choose_batch_tile(batch, t_in, feat_in, hidden_pad, x_itemsize,
                       vmem_budget_bytes):
    """Largest multiple-of-8 batch tile that (a) keeps the estimated VMEM use
    (double-buffered tiles + in-kernel f32 temps) under a v7x-safe budget and
    (b) keeps the grid >= 2 steps when the batch is large enough (v7x megacore)."""
    lane_f = _rup(feat_in, _LANE)

    def vmem_need(tb):
        x_tile = tb * t_in * lane_f * x_itemsize        # input tile (double-buffered)
        out_tile = tb * hidden_pad * 4                  # output tile (double-buffered)
        temps = 3 * tb * t_in * hidden_pad * 4          # y, acc, rolled temp (f32)
        temps += tb * t_in * lane_f * x_itemsize        # masked x copy
        return 2 * x_tile + 2 * out_tile + temps + (1 << 20)   # + weight/bias/slack

    # Aim for multi-MiB x tiles (per-grid-step overhead ~0.35 us).
    tb = max(8, ((4 << 20) // max(1, t_in * feat_in * x_itemsize)) // 8 * 8)
    tb = min(tb, 512)
    tb = min(tb, _rup(batch, 8))      # never pad the batch beyond one tile's worth
    tb = max(tb, 8)
    while tb > 8 and vmem_need(tb) > vmem_budget_bytes:
        tb -= 8
    # Keep >= 2 grid steps so the batch axis can shard across v7x's 2 TensorCores.
    while tb > 8 and batch > 8 and -(-batch // tb) < 2:
        tb = max(8, (tb // 2) // 8 * 8)
    return tb


def deepr_layer(x, weight, bias, mask=None, *,
                compute_dtype=jnp.bfloat16, batch_tile=None):
    """DeeprLayer forward.

    x:      [B, T, F] (batch, seq_len, feature_size)
    weight: [H, F, K] (PyTorch Conv1d layout: out_ch, in_ch, kernel)
    bias:   [H]
    mask:   optional [B, T] (1 = valid, 0 = invalid)
    returns [B, H]
    """
    B, T, F = x.shape
    H, F_w, K = weight.shape
    assert F_w == F
    t_out = T - K + 1
    assert t_out >= 1
    assert T % 8 == 0, "seq_len must be a multiple of 8"

    out_dtype = x.dtype
    has_mask = mask is not None

    # Mask folded in as feature column 0 (single DMA stream, no lane-padded
    # (TB, T, 1) tile).  The concat fuses with the compute-dtype cast into a
    # single wrapper pass over x; the cast also halves x's HBM/DMA bytes.
    if has_mask:
        x_in = jnp.concatenate([mask.astype(x.dtype)[..., None], x], axis=-1)
    else:
        x_in = x
    x_in = x_in.astype(compute_dtype)
    F_in = F + (1 if has_mask else 0)

    # Fused conv weight: (F_in, Hp) with tap k in lanes [k*H, (k+1)*H);
    # row 0 is zero when the mask column is present.
    KH = K * H
    Hp = _rup(KH, _LANE)
    w_taps = jnp.transpose(weight, (2, 1, 0))            # (K, F, H): [k, f, h]
    w_taps = jnp.transpose(w_taps, (1, 0, 2)).reshape(F, KH)   # [f, k*H + h]
    row0 = 1 if has_mask else 0
    w_all = jnp.zeros((F_in, Hp), jnp.float32)
    w_all = w_all.at[row0:row0 + F, :KH].set(w_taps.astype(jnp.float32))
    w_all = w_all.astype(compute_dtype)
    b_all = jnp.zeros((1, Hp), jnp.float32).at[0, :H].set(bias.astype(jnp.float32))

    # Batch tile sized against a v7x-safe VMEM budget; explicit scoped limit
    # (v5e default is only 16 MiB, v6e/v7x 32 MiB).
    vmem_budget = 32 * 1024 * 1024
    if batch_tile is None:
        TB = _choose_batch_tile(B, T, F_in, Hp,
                                jnp.dtype(compute_dtype).itemsize, vmem_budget)
    else:
        assert batch_tile % 8 == 0 and batch_tile >= 8
        TB = batch_tile

    Bp = _rup(B, TB)
    if Bp != B:
        # Padded rows are zeros -> relu(bias) -> sliced off below.
        x_in = jnp.pad(x_in, ((0, Bp - B), (0, 0), (0, 0)))

    kernel = functools.partial(
        _deepr_kernel,
        kernel_size=K, hidden_size=H, hidden_pad=Hp, feat_in=F_in,
        t_in=T, t_out=t_out, tb=TB, has_mask=has_mask)

    out = pl.pallas_call(
        kernel,
        out_shape=jax.ShapeDtypeStruct((Bp, Hp), jnp.float32),
        grid_spec=pltpu.PrefetchScalarGridSpec(
            num_scalar_prefetch=0,
            grid=(Bp // TB,),
            in_specs=[
                pl.BlockSpec((TB, T, F_in), lambda b: (b, 0, 0)),   # x (+mask col) tile
                pl.BlockSpec((F_in, Hp), lambda b: (0, 0)),         # fused conv weight
                pl.BlockSpec((1, Hp), lambda b: (0, 0)),            # bias
            ],
            out_specs=pl.BlockSpec((TB, Hp), lambda b: (b, 0)),     # lane-dense slab
        ),
        compiler_params=pltpu.CompilerParams(
            dimension_semantics=("parallel",),
            vmem_limit_bytes=48 * 1024 * 1024,
        ),
    )(x_in, w_all, b_all)
    return out[:B, :H].astype(out_dtype)


def deepr_reference(x, weight, bias, mask=None):
    """Pure-JAX reference matching the PyTorch module semantics."""
    if mask is not None:
        x = x * mask[..., None]
    B, T, F = x.shape
    H, _, K = weight.shape
    t_out = T - K + 1
    out = jnp.zeros((B, t_out, H), jnp.float32)
    for k in range(K):
        out = out + jnp.einsum("btf,hf->bth", x[:, k:k + t_out, :], weight[:, :, k],
                               precision=jax.lax.Precision.HIGHEST)
    out = out + bias[None, None, :]
    out = jnp.maximum(out, 0.0)
    return jnp.max(out, axis=1)


if __name__ == "__main__":
    # small shapes consistent with the module:
    #   batch=2, seq_len=16, feature_size=32, window=2 -> kernel_size=5, hidden_size=8
    B, T, F = 2, 16, 32
    window, H = 2, 8
    K = 2 * window + 1

    key = jax.random.PRNGKey(0)
    kx, km, kw, kb = jax.random.split(key, 4)

    x = jax.random.normal(kx, (B, T, F), dtype=jnp.float32)
    mask = (jax.random.uniform(km, (B, T)) > 0.2).astype(jnp.float32)

    # deterministic Conv1d-style init (uniform in [-1/sqrt(F*K), 1/sqrt(F*K)])
    bound = 1.0 / math.sqrt(F * K)
    weight = jax.random.uniform(kw, (H, F, K), minval=-bound, maxval=bound,
                                dtype=jnp.float32)
    bias = jax.random.uniform(kb, (H,), minval=-bound, maxval=bound,
                              dtype=jnp.float32)

    ref = deepr_reference(x, weight, bias, mask)

    # f32 operand path (tolerance allows for the MXU's default f32 matmul mode).
    out_f32 = jax.block_until_ready(
        deepr_layer(x, weight, bias, mask, compute_dtype=jnp.float32))
    assert out_f32.shape == (B, H)
    assert jnp.allclose(out_f32, ref, atol=2e-2, rtol=2e-2), (out_f32, ref)

    # Default fast path: bf16 MXU operands, f32 accumulation.
    out_bf16 = jax.block_until_ready(deepr_layer(x, weight, bias, mask))
    assert out_bf16.shape == (B, H)
    assert jnp.allclose(out_bf16, ref, atol=5e-2, rtol=5e-2), (out_bf16, ref)

    # No-mask path.
    ref_nm = deepr_reference(x, weight, bias, None)
    out_nm = jax.block_until_ready(
        deepr_layer(x, weight, bias, None, compute_dtype=jnp.float32))
    assert out_nm.shape == (B, H)
    assert jnp.allclose(out_nm, ref_nm, atol=2e-2, rtol=2e-2), (out_nm, ref_nm)

    print("KERNEL_OK")
</pallas_src>

<mosaic_0001>
module attributes {stable_mosaic.version = 11 : i64} {
  func.func @_deepr_kernel(%arg0: i32, %arg1: memref<8x16x33xf32, #tpu.memory_space<vmem>>, %arg2: memref<33x128xf32, #tpu.memory_space<vmem>>, %arg3: memref<1x128xf32, #tpu.memory_space<vmem>>, %arg4: memref<8x128xf32, #tpu.memory_space<vmem>>) attributes {dimension_semantics = [#tpu.dimension_semantics<parallel>], iteration_bounds = array<i64: 1>, scalar_prefetch = 0 : i64, scratch_operands = 0 : i64, tpu.core_type = #tpu.core_type<tc>, window_params = [{transform_indices = @transform_0, window_bounds = array<i64: 8, 16, 33>}, {pipeline_mode = #tpu.pipeline_mode<synchronous>, transform_indices = @transform_1, window_bounds = array<i64: 33, 128>}, {pipeline_mode = #tpu.pipeline_mode<synchronous>, transform_indices = @transform_2, window_bounds = array<i64: 1, 128>}, {transform_indices = @transform_3, window_bounds = array<i64: 8, 128>}]} {
    %c0 = arith.constant 0 : index
    %c0_0 = arith.constant 0 : index
    %c0_1 = arith.constant 0 : index
    %0 = vector.load %arg1[%c0, %c0_0, %c0_1] : memref<8x16x33xf32, #tpu.memory_space<vmem>>, vector<8x16x33xf32>
    %c0_2 = arith.constant 0 : index
    %c0_3 = arith.constant 0 : index
    %c0_4 = arith.constant 0 : index
    %1 = vector.load %arg1[%c0_2, %c0_3, %c0_4] : memref<8x16x33xf32, #tpu.memory_space<vmem>>, vector<8x16x1xf32>
    %2 = vector.broadcast %1 : vector<8x16x1xf32> to vector<8x16x33xf32>
    %3 = arith.mulf %0, %2 : vector<8x16x33xf32>
    %4 = vector.shape_cast %3 : vector<8x16x33xf32> to vector<128x33xf32>
    %c0_5 = arith.constant 0 : index
    %c0_6 = arith.constant 0 : index
    %5 = vector.load %arg2[%c0_5, %c0_6] : memref<33x128xf32, #tpu.memory_space<vmem>>, vector<33x128xf32>
    %cst = arith.constant dense<0.000000e+00> : vector<128x128xf32>
    %6 = tpu.matmul %4, %5, %cst {dimension_numbers = #tpu.dot_dimension_numbers<[1], [0], [0], [1], [0, 0, 1, 1], [], []>} : vector<128x33xf32>, vector<33x128xf32>, vector<128x128xf32> -> vector<128x128xf32>
    %c127_i32 = arith.constant 127 : i32
    %7 = tpu.dynamic_rotate %6 by %c127_i32 dim 0 : vector<128x128xf32>, i32 -> vector<128x128xf32>
    %c120_i32 = arith.constant 120 : i32
    %8 = tpu.dynamic_rotate %7 by %c120_i32 dim 1 : vector<128x128xf32>, i32 -> vector<128x128xf32>
    %9 = arith.addf %6, %8 : vector<128x128xf32>
    %c126_i32 = arith.constant 126 : i32
    %10 = tpu.dynamic_rotate %6 by %c126_i32 dim 0 : vector<128x128xf32>, i32 -> vector<128x128xf32>
    %c112_i32 = arith.constant 112 : i32
    %11 = tpu.dynamic_rotate %10 by %c112_i32 dim 1 : vector<128x128xf32>, i32 -> vector<128x128xf32>
    %12 = arith.addf %9, %11 : vector<128x128xf32>
    %c125_i32 = arith.constant 125 : i32
    %13 = tpu.dynamic_rotate %6 by %c125_i32 dim 0 : vector<128x128xf32>, i32 -> vector<128x128xf32>
    %c104_i32 = arith.constant 104 : i32
    %14 = tpu.dynamic_rotate %13 by %c104_i32 dim 1 : vector<128x128xf32>, i32 -> vector<128x128xf32>
    %15 = arith.addf %12, %14 : vector<128x128xf32>
    %c124_i32 = arith.constant 124 : i32
    %16 = tpu.dynamic_rotate %6 by %c124_i32 dim 0 : vector<128x128xf32>, i32 -> vector<128x128xf32>
    %c96_i32 = arith.constant 96 : i32
    %17 = tpu.dynamic_rotate %16 by %c96_i32 dim 1 : vector<128x128xf32>, i32 -> vector<128x128xf32>
    %18 = arith.addf %15, %17 : vector<128x128xf32>
    %c0_7 = arith.constant 0 : index
    %c0_8 = arith.constant 0 : index
    %19 = vector.load %arg3[%c0_7, %c0_8] : memref<1x128xf32, #tpu.memory_space<vmem>>, vector<1x128xf32>
    %20 = vector.broadcast %19 : vector<1x128xf32> to vector<128x128xf32>
    %21 = arith.addf %18, %20 : vector<128x128xf32>
    %cst_9 = arith.constant 0.000000e+00 : f32
    %22 = vector.broadcast %cst_9 : f32 to vector<128x128xf32>
    %23 = arith.maximumf %21, %22 : vector<128x128xf32>
    %24 = vector.shape_cast %23 : vector<128x128xf32> to vector<8x16x128xf32>
    %25 = tpu.iota {dimensions = array<i32: 1>} : vector<1x16x1xi32>
    %c12_i32 = arith.constant 12 : i32
    %26 = vector.broadcast %c12_i32 : i32 to vector<1x16x1xi32>
    %27 = arith.cmpi slt, %25, %26 : vector<1x16x1xi32>
    %cst_10 = arith.constant 0.000000e+00 : f32
    %28 = vector.shape_cast %27 : vector<1x16x1xi1> to vector<1x16x1xi1>
    %29 = vector.broadcast %28 : vector<1x16x1xi1> to vector<8x16x128xi1>
    %30 = vector.broadcast %cst_10 : f32 to vector<8x16x128xf32>
    %31 = arith.select %29, %24, %30 : vector<8x16x128xi1>, vector<8x16x128xf32>
    %cst_11 = arith.constant dense<0xFF800000> : vector<8x128xf32>
    %32 = vector.multi_reduction <maximumf>, %31, %cst_11 [1] : vector<8x16x128xf32> to vector<8x128xf32>
    %c0_12 = arith.constant 0 : index
    %c0_13 = arith.constant 0 : index
    %33 = vector.load %arg4[%c0_12, %c0_13] : memref<8x128xf32, #tpu.memory_space<vmem>>, vector<8x128xf32>
    tpu.vector_store %arg4[%c0_12, %c0_13], %32 {strides = array<i32>} : memref<8x128xf32, #tpu.memory_space<vmem>>, vector<8x128xf32>,
    return
  }
  func.func @transform_0(%arg0: i32) -> (i32, i32, i32) {
    %c0_i32 = arith.constant 0 : i32
    %c0_i32_0 = arith.constant 0 : i32
    %c0_i32_1 = arith.constant 0 : i32
    return %arg0, %c0_i32, %c0_i32_0 : i32, i32, i32
  }
  func.func @transform_1(%arg0: i32) -> (i32, i32) {
    %c0_i32 = arith.constant 0 : i32
    %c0_i32_0 = arith.constant 0 : i32
    %c0_i32_1 = arith.constant 0 : i32
    return %c0_i32, %c0_i32_0 : i32, i32
  }
  func.func @transform_2(%arg0: i32) -> (i32, i32) {
    %c0_i32 = arith.constant 0 : i32
    %c0_i32_0 = arith.constant 0 : i32
    %c0_i32_1 = arith.constant 0 : i32
    return %c0_i32, %c0_i32_0 : i32, i32
  }
  func.func @transform_3(%arg0: i32) -> (i32, i32) {
    %c0_i32 = arith.constant 0 : i32
    %c0_i32_0 = arith.constant 0 : i32
    return %arg0, %c0_i32 : i32, i32
  }
}

</mosaic_0001>

<bundles_post_ra>
// kernel: tpu_custom_call.1
= control target key start
LH: loop header
LB: loop body
LE: loop exit
PB: predicated region body
PF: predicated region fallthrough
CT: control target
= control target key end

     0   :  { %8 = vsyncpa [#allocation3], 0  ;;  %s1597_s0 = inlined_call_operand.hbm [shape: f32[8,16,33], index: 0, kind: input, shape index: {}]   ;;  %s1598_s1 = inlined_call_operand.hbm [shape: f32[33,128], index: 1, kind: input, shape index: {}]   ;;  %s1599_s2 = inlined_call_operand.vmem [shape: f32[1,128], index: 2, kind: input, shape index: {}]   ;;  %s1600_s3 = inlined_call_operand.hbm [shape: f32[8,128], index: 3, kind: output, shape index: {}]  }
   0x1   :  { %9 = vsyncpa [#allocation6], 0 }
   0x2   :  { %10 = vsyncpa [#allocation4], 0  ;;  %s15_s14 = sshll.u32 %s1597_s0, 4  ;;  %s889_s15 = smov [#allocation2]   ;;  %s16_s14 = int_to_ptr.hbm [resolvable:$true] %s15_s14 }
   0x3   :  { %s17_s16 = sshll.u32 %s889_s15, 4  ;;  %s28_s19 = sshll.u32 %s1598_s1, 4  ;;  %s18_s16 = int_to_ptr.vmem [resolvable:$true] %s17_s16  ;;  %s29_s19 = int_to_ptr.hbm [resolvable:$true] %s28_s19 }
   0x4   :  { %s890_s20 = smov 128   ;;  %s891_s21 = smov 8  }
   0x5   :  { %23 = dma.hbm_to_vmem [thread:$0]  %s16_s14, 2048, %s18_s16, [#allocation3], %s890_s20, %s890_s20, %s891_s21  }
   0x6   :  { %s892_s22 = smov [#allocation5]  }
   0x7   :  { %s30_s23 = sshll.u32 %s892_s22, 4  ;;  %s31_s23 = int_to_ptr.vmem [resolvable:$true] %s30_s23 }
   0x8   :  { %36 = dma.hbm_to_vmem [thread:$0]  %s29_s19, 640, %s31_s23, [#allocation6], %s890_s20, %s890_s20, %s891_s21  }
   0x9   :  { %883 = dma.done.wait [#allocation3], 2048  }
   0xa   :  { %884 = vsyncadd [#allocation3], 4294965248 }
   0xb   :  { %885 = dma.done.wait [#allocation6], 640  }
   0xc   :  { %886 = vsyncadd [#allocation6], 4294966656  ;;  %v893_v0 = vmov 0   ;;  %v59_v1 = vld [vmem:[#allocation2 + $0x60] sm:$0xff]  ;;  %v925_v2 = vld [vmem:[#allocation2 + $0x10] sm:$0xff]  ;;  %vm213_vm0 = vcmask 1040384   ;;  %v298_v55 = vlaneseq }
   0xd   :  { %809 = vset.pattern.permute.xlu2 %v893_v0  ;;  %808 = vset.pattern.permute.xlu1 %v893_v0  ;;  %v927_v3 = vld [vmem:[#allocation2] sm:$0xff]  ;;  %v933_v6 = vld [vmem:[#allocation2 + $0x8] sm:$0xff]  ;;  %v53_v10 = vld [vmem:[#allocation2 + $0x30] sm:$0xff]  ;;  %vm164_vm1 = vcmask 269312   ;;  %s894_s0 = smov 120   ;;  %s895_s1 = smov 112  }
   0xe   :  { %807 = vset.pattern.permute.xlu0 %v893_v0  ;;  %125 = vperm.xlu2 %809, %v59_v1   ;;  %v51_v4 = vld [vmem:[#allocation2 + $0x20] sm:$0xff]  ;;  %v52_v7 = vld [vmem:[#allocation2 + $0x28] sm:$0xff]  ;;  %v943_v11 = vld [vmem:[#allocation2 + $0x70] sm:$0xff]  ;;  %v991_v56 = vshrl.u32 %v298_v55, 7  ;;  %s896_s24 = smov 104   ;;  %s897_s25 = smov 96  }
   0xf   :  { %75 = vperm.xlu1 %808, %v925_v2   ;;  %65 = vperm.xlu0 %807, %v927_v3   ;;  %v931_v5 = vld [vmem:[#allocation2 + $0x40] sm:$0xff]  ;;  %v937_v8 = vld [vmem:[#allocation2 + $0x68] sm:$0xff]  ;;  %v945_v12 = vld [vmem:[#allocation2 + $0x50] sm:$0xff]  ;;  %vm731_vm7 = vcmask 1041409   ;;  %vm733_vm8 = vcmask 1042434   ;;  %vm735_vm9 = vcmask 1043459  }
  0x10   :  { %v939_v9 = vld [vmem:[#allocation2 + $0x48] sm:$0xff]  ;;  %v949_v13 = vld [vmem:[#allocation2 + $0x78] sm:$0xff]  ;;  %v163_v17 = vld [vmem:[#allocation5 + $0x20] sm:$0x1]  ;;  %vm300_vm2 = vcmp.lt.s32.totalorder %v991_v56, 7  ;;  %vm381_vm3 = vcmp.lt.s32.totalorder %v991_v56, 6 }
  0x11   :  { %v951_v14 = vld [vmem:[#allocation2 + $0x18] sm:$0xff]  ;;  %782 = vmatpush.msk.msra.mxu1 %vm213_vm0, %v163_v17  ;;  %784 = vmatpush.msk.msra.mxu3 %vm213_vm0, %v163_v17  ;;  %v161_v19 = vld [vmem:[#allocation5 + $0x10] sm:$0xff]  ;;  %v160_v20 = vld [vmem:[#allocation5 + $0x8] sm:$0xff]  ;;  %vm462_vm4 = vcmp.lt.s32.totalorder %v991_v56, 5  ;;  %vm543_vm5 = vcmp.lt.s32.totalorder %v991_v56, 4  ;;  %vm737_vm10 = vcmask 1044484  }
  0x12   :  { %v953_v15 = vld [vmem:[#allocation2 + $0x58] sm:$0xff]  ;;  %765 = vmatpush.msk.msra.mxu0 %vm213_vm0, %v163_v17  ;;  %783 = vmatpush.msk.msra.mxu2 %vm213_vm0, %v163_v17  ;;  %v159_v21 = vld [vmem:[#allocation5] sm:$0xff]  ;;  %vm739_vm11 = vcmask 1045509   ;;  %vm741_vm12 = vcmask 1046534   ;;  %s754_s4 = sshll.u32 %s1600_s3, 4  ;;  %vm743_vm13 = vcmask 1047559   ;;  %s755_s4 = int_to_ptr.hbm [resolvable:$true] %s754_s4 }
  0x13   :  { %v958_v16 = vld [vmem:[#allocation2 + $0x38] sm:$0xff] }
  0x14   :  { %v162_v18 = vld [vmem:[#allocation5 + $0x18] sm:$0xff] }
  0x15   :  { %785 = vmatpush.msra.mxu1 %v162_v18  ;;  %787 = vmatpush.msra.mxu3 %v162_v18 }
  0x16   :  { %85 = vperm.xlu2 %809, %v51_v4   ;;  %229 = vmatpush.msra.mxu0 %v162_v18 }
  0x17   :  { %105 = vperm.xlu1 %808, %v931_v5   ;;  %70 = vperm.xlu0 %807, %v933_v6  }
  0x18   :  { %786 = vmatpush.msra.mxu2 %v162_v18  ;;  %788 = vmatpush.msra.mxu1 %v161_v19 }
  0x19   :  { %790 = vmatpush.msra.mxu3 %v161_v19  ;;  %230 = vmatpush.msra.mxu0 %v161_v19 }
  0x1a   :  { %789 = vmatpush.msra.mxu2 %v161_v19  ;;  %791 = vmatpush.msra.mxu1 %v160_v20 }
  0x1b   :  { %793 = vmatpush.msra.mxu3 %v160_v20  ;;  %231 = vmatpush.msra.mxu0 %v160_v20 }
  0x1c   :  { %792 = vmatpush.msra.mxu2 %v160_v20  ;;  %794 = vmatpush.msra.mxu1 %v159_v21 }
  0x1d   :  { %796 = vmatpush.msra.mxu3 %v159_v21  ;;  %232 = vmatpush.msra.mxu0 %v159_v21 }
  0x1e   :  { %90 = vperm.xlu2 %809, %v52_v7   ;;  %795 = vmatpush.msra.mxu2 %v159_v21 }
  0x1f   :  { %130 = vperm.xlu1 %808, %v937_v8   ;;  %110 = vperm.xlu0 %807, %v939_v9  }
  0x26   :  { %95 = vperm.xlu2 %809, %v53_v10  }
  0x27   :  { %135 = vperm.xlu1 %808, %v943_v11   ;;  %115 = vperm.xlu0 %807, %v945_v12  }
  0x2e   :  { %140 = vperm.xlu2 %809, %v949_v13  }
  0x2f   :  { %80 = vperm.xlu1 %808, %v951_v14   ;;  %120 = vperm.xlu0 %807, %v953_v15  }
  0x37   :  { %100 = vperm.xlu0 %807, %v958_v16  }
  0x68   :  { %v126_v22 = vpop.permute.xlu2 %125 }
  0x69   :  { %v155_v23 = vmul.f32 %v126_v22, %v59_v1 }
  0x6b   :  { %778 = vmatmul.msk.f32.vlgmr.msra.gmra.mxu3 %vm164_vm1, %v155_v23 }
  0x70   :  { %v86_v24 = vpop.permute.xlu2 %85 }
  0x71   :  { %v147_v25 = vmul.f32 %v86_v24, %v51_v4 }
  0x73   :  { %770 = vmatmul.msk.f32.vlgmr.msra.gmra.mxu1 %vm164_vm1, %v147_v25 }
  0x78   :  { %v91_v26 = vpop.permute.xlu2 %90 }
  0x79   :  { %v148_v27 = vmul.f32 %v91_v26, %v52_v7 }
  0x7b   :  { %771 = vmatmul.msk.f32.gmra.mxu1 %vm164_vm1, %v148_v27 }
  0x80   :  { %v96_v28 = vpop.permute.xlu2 %95 }
  0x81   :  { %v76_v29 = vpop.permute.xlu1 %75  ;;  %v149_v30 = vmul.f32 %v96_v28, %v53_v10  ;;  %v66_v31 = vpop.permute.xlu0 %65 }
  0x82   :  { %v143_v32 = vmul.f32 %v66_v31, %v927_v3  ;;  %v145_v40 = vmul.f32 %v76_v29, %v925_v2 }
  0x83   :  { %772 = vmatmul.msk.f32.gmra.mxu1 %vm164_vm1, %v149_v30 }
  0x84   :  { %766 = vmatmul.msk.f32.vlgmr.msra.gmra.mxu0 %vm164_vm1, %v143_v32 }
  0x88   :  { %v141_v46 = vpop.permute.xlu2 %140 }
  0x89   :  { %v106_v33 = vpop.permute.xlu1 %105  ;;  %v71_v35 = vpop.permute.xlu0 %70  ;;  %v158_v48 = vmul.f32 %v141_v46, %v949_v13 }
  0x8a   :  { %v151_v34 = vmul.f32 %v106_v33, %v931_v5  ;;  %v144_v36 = vmul.f32 %v71_v35, %v933_v6 }
  0x8c   :  { %774 = vmatmul.msk.f32.vlgmr.msra.gmra.mxu2 %vm164_vm1, %v151_v34  ;;  %767 = vmatmul.msk.f32.gmra.mxu0 %vm164_vm1, %v144_v36 }
  0x91   :  { %v131_v37 = vpop.permute.xlu1 %130  ;;  %v111_v39 = vpop.permute.xlu0 %110 }
  0x92   :  { %v156_v38 = vmul.f32 %v131_v37, %v937_v8  ;;  %v152_v41 = vmul.f32 %v111_v39, %v939_v9 }
  0x94   :  { %779 = vmatmul.msk.f32.gmra.mxu3 %vm164_vm1, %v156_v38  ;;  %768 = vmatmul.msk.f32.gmra.mxu0 %vm164_vm1, %v145_v40 }
  0x95   :  { %775 = vmatmul.msk.f32.gmra.mxu2 %vm164_vm1, %v152_v41 }
  0x99   :  { %v136_v42 = vpop.permute.xlu1 %135  ;;  %v116_v44 = vpop.permute.xlu0 %115 }
  0x9a   :  { %v157_v43 = vmul.f32 %v136_v42, %v943_v11  ;;  %v153_v45 = vmul.f32 %v116_v44, %v945_v12 }
  0x9c   :  { %780 = vmatmul.msk.f32.gmra.mxu3 %vm164_vm1, %v157_v43 }
  0x9d   :  { %776 = vmatmul.msk.f32.gmra.mxu2 %vm164_vm1, %v153_v45 }
  0xa1   :  { %v81_v47 = vpop.permute.xlu1 %80  ;;  %v121_v50 = vpop.permute.xlu0 %120 }
  0xa2   :  { %v146_v49 = vmul.f32 %v81_v47, %v951_v14  ;;  %v154_v51 = vmul.f32 %v121_v50, %v953_v15 }
  0xa4   :  { %769 = vmatmul.msk.f32.gmra.mxu0 %vm164_vm1, %v146_v49  ;;  %781 = vmatmul.msk.f32.gmra.mxu3 %vm164_vm1, %v158_v48 }
  0xa5   :  { %777 = vmatmul.msk.f32.gmra.mxu2 %vm164_vm1, %v154_v51 }
  0xa9   :  { %v101_v52 = vpop.permute.xlu0 %100 }
  0xaa   :  { %v150_v53 = vmul.f32 %v101_v52, %v958_v16 }
  0xac   :  { %773 = vmatmul.msk.f32.gmra.mxu1 %vm164_vm1, %v150_v53 }
  0xee   :  { %v1053_v14 = vpop.f32.mrf.mxu3 }
  0xef   :  { %v377_v24 = vrot.slane %v1053_v14, 2  ;;  %v1601_v27 = vrot.slane %v1053_v14, 4  ;;  %v294_v49 = vrot.slane %v1053_v14, 1 }
  0xf0   :  { %v989_v54 = vpop.f32.mrf.mxu1 }
  0xf1   :  { %v286_v57 = vrot.slane %v989_v54, 1  ;;  %v369_v58 = vrot.slane %v989_v54, 2  ;;  %v450_v17 = vrot.slane %v989_v54, 3  ;;  %v531_v31 = vrot.slane %v989_v54, 4 }
  0xf8   :  { %v995_v59 = vpop.f32.mrf.mxu1 }
  0xf9   :  { %v287_v60 = vrot.slane %v995_v59, 1  ;;  %v370_v61 = vrot.slane %v995_v59, 2  ;;  %v451_v18 = vrot.slane %v995_v59, 3  ;;  %v532_v32 = vrot.slane %v995_v59, 4 }
  0xfb   :  { %v311_v62 = vsel %vm300_vm2, %v286_v57, %v287_v60  ;;  %v392_v63 = vsel %vm381_vm3, %v369_v58, %v370_v61  ;;  %v473_v21 = vsel %vm462_vm4, %v450_v17, %v451_v18  ;;  %v554_v37 = vsel %vm543_vm5, %v531_v31, %v532_v32 }
  0xfc   :  { %325 = vrot.lane.b32.xlu2 %v311_v62, %s894_s0  ;;  %406 = vrot.lane.b32.xlu0 %v392_v63, %s895_s1 }
 0x100   :  { %v1013_v0 = vpop.f32.mrf.mxu1 }
 0x101   :  { %v1015_v1 = vpop.f32.mrf.mxu0  ;;  %v1604_v2 = vrot.slane %v1013_v0, 2  ;;  %v288_v51 = vrot.slane %v1013_v0, 1 }
 0x102   :  { %v446_v5 = vrot.slane %v1015_v1, 3  ;;  %v365_v6 = vrot.slane %v1015_v1, 2  ;;  %v282_v9 = vrot.slane %v1015_v1, 1  ;;  %v527_v19 = vrot.slane %v1015_v1, 4 }
 0x103   :  { %v1022_v3 = vsel %vm381_vm3, %v370_v61, %v1604_v2 }
 0x109   :  { %v1024_v4 = vpop.f32.mrf.mxu0 }
 0x10a   :  { %v1615_v7 = vrot.slane %v1024_v4, 3  ;;  %v366_v8 = vrot.slane %v1024_v4, 2  ;;  %v283_v10 = vrot.slane %v1024_v4, 1  ;;  %v1610_v16 = vrot.slane %v1024_v4, 4 }
 0x10c   :  { %v477_v11 = vsel %vm462_vm4, %v446_v5, %v1615_v7  ;;  %v396_v12 = vsel %vm381_vm3, %v365_v6, %v366_v8  ;;  %v315_v13 = vsel %vm300_vm2, %v282_v9, %v283_v10  ;;  %v558_v20 = vsel %vm543_vm5, %v527_v19, %v1610_v16 }
 0x10d   :  { %479 = vrot.lane.b32.xlu0 %v477_v11, %s896_s24  ;;  %398 = vrot.lane.b32.xlu2 %v396_v12, %s895_s1 }
 0x10e   :  { %317 = vrot.lane.b32.xlu1 %v315_v13, %s894_s0 }
 0x10f   :  { %v1056_v15 = vpop.f32.mrf.mxu2 }
 0x110   :  { %v1609_v34 = vrot.slane %v1056_v15, 1  ;;  %v454_v39 = vrot.slane %v1056_v15, 3  ;;  %v535_v50 = vrot.slane %v1056_v15, 4 }
 0x111   :  { %v1083_v28 = vpop.f32.mrf.mxu0 }
 0x112   :  { %v1607_v52 = vrot.slane %v1083_v28, 1  ;;  %v367_v53 = vrot.slane %v1083_v28, 2  ;;  %v1612_v55 = vrot.slane %v1083_v28, 4 }
 0x115   :  { %560 = vrot.lane.b32.xlu0 %v558_v20, %s897_s25 }
 0x116   :  { %487 = vrot.lane.b32.xlu1 %v473_v21, %s896_s24 }
 0x117   :  { %v1075_v22 = vpop.f32.mrf.mxu3 }
 0x118   :  { %v1077_v23 = vpop.f32.mrf.mxu2  ;;  %v378_v25 = vrot.slane %v1075_v22, 2  ;;  %v1603_v26 = vrot.slane %v1075_v22, 4  ;;  %v295_v43 = vrot.slane %v1075_v22, 1 }
 0x119   :  { %v1605_v29 = vrot.slane %v1077_v23, 1  ;;  %v1617_v36 = vrot.slane %v1077_v23, 3  ;;  %v1613_v44 = vrot.slane %v1077_v23, 4  ;;  %v1614_v11 = vrot.slane %v1077_v23, 2 }
 0x11a   :  { %v384_v30 = vsel %vm381_vm3, %v377_v24, %v378_v25  ;;  %v1100_v33 = vsel %vm543_vm5, %v1601_v27, %v1603_v26  ;;  %v303_v62 = vsel %vm300_vm2, %v294_v49, %v295_v43 }
 0x11b   :  { %422 = vrot.lane.b32.xlu2 %v384_v30, %s895_s1  ;;  %v307_v35 = vsel %vm300_vm2, %v1609_v34, %v1605_v29  ;;  %v469_v42 = vsel %vm462_vm4, %v454_v39, %v1617_v36  ;;  %v550_v63 = vsel %vm543_vm5, %v535_v50, %v1613_v44  ;;  %v452_v30 = vrot.slane %v1013_v0, 3 }
 0x11d   :  { %333 = vrot.lane.b32.xlu0 %v307_v35, %s894_s0  ;;  %v533_v35 = vrot.slane %v1013_v0, 4 }
 0x11e   :  { %568 = vrot.lane.b32.xlu1 %v554_v37, %s897_s25 }
 0x11f   :  { %v1117_v38 = vpop.f32.mrf.mxu3 }
 0x120   :  { %v1120_v40 = vpop.f32.mrf.mxu2 }
 0x121   :  { %v1122_v41 = vpop.f32.mrf.mxu0  ;;  %v537_v44 = vrot.slane %v1120_v40, 4 }
 0x122   :  { %v1608_v45 = vrot.slane %v1122_v41, 1  ;;  %v368_v46 = vrot.slane %v1122_v41, 2  ;;  %v1602_v47 = vrot.slane %v1122_v41, 3  ;;  %v530_v48 = vrot.slane %v1122_v41, 4 }
 0x123   :  { %495 = vrot.lane.b32.xlu2 %v469_v42, %s896_s24 }
 0x124   :  { %v1147_v61 = vsel %vm381_vm3, %v368_v46, %v369_v58  ;;  %v1162_v12 = vsel %vm462_vm4, %v1602_v47, %v450_v17  ;;  %v1171_v58 = vsel %vm300_vm2, %v1608_v45, %v286_v57  ;;  %v1175_v13 = vsel %vm543_vm5, %v530_v48, %v531_v31 }
 0x125   :  { %576 = vrot.lane.b32.xlu0 %v550_v63, %s897_s25  ;;  %v1179_v20 = vsel %vm381_vm3, %v367_v53, %v368_v46  ;;  %v1185_v17 = vsel %vm543_vm5, %v1612_v55, %v530_v48  ;;  %v1606_v57 = vrot.slane %v1056_v15, 2  ;;  %v458_v31 = vrot.slane %v1053_v14, 3 }
 0x126   :  { %341 = vrot.lane.b32.xlu1 %v303_v62, %s894_s0  ;;  %v310_v62 = vsel %vm300_vm2, %v287_v60, %v288_v51  ;;  %v314_v47 = vsel %vm300_vm2, %v283_v10, %v1607_v52  ;;  %v456_v55 = vrot.slane %v1120_v40, 3 }
 0x127   :  { %v1188_v21 = vpop.f32.mrf.mxu3  ;;  %v388_v26 = vsel %vm381_vm3, %v1606_v57, %v1614_v11  ;;  %v541_v11 = vrot.slane %v1117_v38, 4 }
 0x128   :  { %v1194_v37 = vpop.f32.mrf.mxu2  ;;  %v1611_v42 = vrot.slane %v1188_v21, 1  ;;  %v380_v46 = vrot.slane %v1188_v21, 2  ;;  %v461_v48 = vrot.slane %v1188_v21, 3  ;;  %v542_v16 = vrot.slane %v1188_v21, 4 }
 0x129   :  { %v1616_v63 = vrot.slane %v1194_v37, 1  ;;  %v457_v27 = vrot.slane %v1194_v37, 3  ;;  %v376_v60 = vrot.slane %v1194_v37, 2  ;;  %v1218_v2 = vpop.f32.mrf.mxu1  ;;  %v538_v52 = vrot.slane %v1194_v37, 4 }
 0x12a   :  { %v1224_v29 = vsel %vm381_vm3, %v380_v46, %v365_v6  ;;  %v1232_v10 = vsel %vm300_vm2, %v1611_v42, %v282_v9  ;;  %v1238_v57 = vsel %vm462_vm4, %v461_v48, %v446_v5  ;;  %v289_v45 = vrot.slane %v1218_v2, 1 }
 0x12b   :  { %v453_v6 = vrot.slane %v1218_v2, 3  ;;  %v534_v34 = vrot.slane %v1218_v2, 4  ;;  %319 = vrot.lane.b32.xlu2 %v314_v47, %s894_s0  ;;  %v379_v9 = vrot.slane %v1117_v38, 2  ;;  %v1251_v5 = vsel %vm300_vm2, %v1616_v63, %v294_v49 }
 0x12c   :  { %v1255_v42 = vsel %vm462_vm4, %v457_v27, %v458_v31  ;;  %v460_v47 = vrot.slane %v1117_v38, 3  ;;  %v1264_v7 = vsel %vm300_vm2, %v288_v51, %v289_v45  ;;  %v1285_v51 = vsel %vm462_vm4, %v456_v55, %v457_v27 }
 0x12d   :  { %327 = vrot.lane.b32.xlu0 %v310_v62, %s894_s0  ;;  %v1268_v49 = vsel %vm543_vm5, %v534_v34, %v535_v50  ;;  %v1272_v63 = vsel %vm543_vm5, %v533_v35, %v534_v34  ;;  %v1280_v36 = vsel %vm462_vm4, %v453_v6, %v454_v39  ;;  %v1291_v34 = vsel %vm543_vm5, %v537_v44, %v538_v52 }
 0x12e   :  { %414 = vrot.lane.b32.xlu1 %v388_v26, %s895_s1  ;;  %v1299_v39 = vsel %vm381_vm3, %v376_v60, %v377_v24  ;;  %v1303_v26 = vsel %vm462_vm4, %v460_v47, %v461_v48  ;;  %v1309_v27 = vsel %vm543_vm5, %v542_v16, %v527_v19  ;;  %v1313_v50 = vsel %vm381_vm3, %v379_v9, %v380_v46 }
 0x12f   :  { %v1317_v62 = vsel %vm543_vm5, %v541_v11, %v542_v16  ;;  %v472_v24 = vsel %vm462_vm4, %v451_v18, %v452_v30  ;;  %v459_v48 = vrot.slane %v1075_v22, 3  ;;  %v395_v19 = vsel %vm381_vm3, %v366_v8, %v367_v53 }
 0x130   :  { %v553_v18 = vsel %vm543_vm5, %v532_v32, %v533_v35  ;;  %v383_v46 = vsel %vm381_vm3, %v378_v25, %v379_v9  ;;  %v296_v8 = vrot.slane %v1117_v38, 1  ;;  %v448_v32 = vrot.slane %v1083_v28, 3 }
 0x131   :  { %v465_v16 = vsel %vm462_vm4, %v458_v31, %v459_v48  ;;  %v1618_v31 = vrot.slane %v1077_v23, 3  ;;  %v1619_v35 = vrot.slane %v1024_v4, 3 }
 0x132   :  { %v302_v53 = vsel %vm300_vm2, %v295_v43, %v296_v8  ;;  %v1620_v43 = vrot.slane %v1077_v23, 2 }
 0x133   :  { %489 = vrot.lane.b32.xlu2 %v472_v24, %s896_s24  ;;  %v468_v25 = vsel %vm462_vm4, %v1618_v31, %v456_v55  ;;  %v476_v9 = vsel %vm462_vm4, %v1619_v35, %v448_v32  ;;  %v1621_v55 = vrot.slane %v1077_v23, 4  ;;  %v1626_v35 = vrot.slane %v1083_v28, 1 }
 0x135   :  { %400 = vrot.lane.b32.xlu0 %v395_v19, %s895_s1  ;;  %v549_v19 = vsel %vm543_vm5, %v1621_v55, %v537_v44  ;;  %v1625_v44 = vrot.slane %v1122_v41, 1  ;;  %v1628_v55 = vrot.slane %v1056_v15, 2 }
 0x136   :  { %503 = vrot.lane.b32.xlu1 %v465_v16, %s896_s24  ;;  %v1622_v16 = vrot.slane %v1083_v28, 4 }
 0x13b   :  { %570 = vrot.lane.b32.xlu2 %v553_v18, %s897_s25  ;;  %v1623_v18 = vrot.slane %v1024_v4, 4 }
 0x13d   :  { %424 = vrot.lane.b32.xlu0 %v383_v46, %s895_s1  ;;  %v557_v46 = vsel %vm543_vm5, %v1623_v18, %v1622_v16  ;;  %v464_v16 = vsel %vm462_vm4, %v459_v48, %v460_v47  ;;  %v1629_v18 = vrot.slane %v1013_v0, 2  ;;  %v1631_v47 = vrot.slane %v1122_v41, 3 }
 0x13e   :  { %408 = vrot.lane.b32.xlu1 %v1022_v3, %s895_s1  ;;  %v375_v3 = vrot.slane %v1120_v40, 2 }
 0x13f   :  { %v475_v48 = vsel %vm462_vm4, %v448_v32, %v1631_v47 }
 0x140   :  { %v387_v24 = vsel %vm381_vm3, %v1620_v43, %v375_v3  ;;  %v1627_v43 = vrot.slane %v1077_v23, 1 }
 0x143   :  { %343 = vrot.lane.b32.xlu2 %v302_v53, %s894_s0  ;;  %v1624_v53 = vrot.slane %v1056_v15, 1 }
 0x145   :  { %497 = vrot.lane.b32.xlu0 %v468_v25, %s896_s24  ;;  %v308_v31 = vsel %vm300_vm2, %v289_v45, %v1624_v53  ;;  %v292_v25 = vrot.slane %v1120_v40, 1  ;;  %v372_v45 = vrot.slane %v1218_v2, 2  ;;  %v1630_v53 = vrot.slane %v1075_v22, 4 }
 0x146   :  { %481 = vrot.lane.b32.xlu1 %v476_v9, %s896_s24  ;;  %v313_v9 = vsel %vm300_vm2, %v1626_v35, %v1625_v44 }
 0x14b   :  { %416 = vrot.lane.b32.xlu2 %v387_v24, %s895_s1  ;;  %v306_v24 = vsel %vm300_vm2, %v1627_v43, %v292_v25  ;;  %v386_v43 = vsel %vm381_vm3, %v375_v3, %v376_v60 }
 0x14d   :  { %578 = vrot.lane.b32.xlu0 %v549_v19, %s897_s25  ;;  %v389_v19 = vsel %vm381_vm3, %v372_v45, %v1628_v55 }
 0x14e   :  { %562 = vrot.lane.b32.xlu1 %v557_v46, %s897_s25  ;;  %v390_v46 = vsel %vm381_vm3, %v1629_v18, %v372_v45 }
 0x153   :  { %331 = vrot.lane.b32.xlu2 %v308_v31, %s894_s0  ;;  %v545_v31 = vsel %vm543_vm5, %v1630_v53, %v541_v11  ;;  %v471_v11 = vsel %vm462_vm4, %v452_v30, %v453_v6  ;;  %v1632_v30 = vrot.slane %v1188_v21, 1 }
 0x155   :  { %321 = vrot.lane.b32.xlu0 %v313_v9, %s894_s0 }
 0x156   :  { %335 = vrot.lane.b32.xlu1 %v306_v24, %s894_s0 }
 0x15b   :  { %404 = vrot.lane.b32.xlu2 %v1147_v61, %s895_s1  ;;  %v326_v61 = vpop.permute.xlu2 %325 }
 0x15c   :  { %v353_v35 = vadd.f32 %v326_v61, %v989_v54 }
 0x15d   :  { %412 = vrot.lane.b32.xlu0 %v389_v19, %s895_s1 }
 0x15e   :  { %505 = vrot.lane.b32.xlu1 %v464_v16, %s896_s24 }
 0x163   :  { %410 = vrot.lane.b32.xlu2 %v390_v46, %s895_s1 }
 0x165   :  { %485 = vrot.lane.b32.xlu0 %v1162_v12, %s896_s24 }
 0x166   :  { %586 = vrot.lane.b32.xlu1 %v545_v31, %s897_s25 }
 0x167   :  { %v399_v44 = vpop.permute.xlu2 %398 }
 0x16b   :  { %483 = vrot.lane.b32.xlu2 %v475_v48, %s896_s24 }
 0x16d   :  { %491 = vrot.lane.b32.xlu0 %v471_v11, %s896_s24 }
 0x16e   :  { %323 = vrot.lane.b32.xlu1 %v1171_v58, %s894_s0  ;;  %v407_v12 = vpop.permute.xlu0 %406  ;;  %v301_v58 = vsel %vm300_vm2, %v296_v8, %v1632_v30 }
 0x16f   :  { %v434_v9 = vadd.f32 %v407_v12, %v353_v35 }
 0x173   :  { %566 = vrot.lane.b32.xlu2 %v1175_v13, %s897_s25 }
 0x175   :  { %v423_v32 = vpop.permute.xlu2 %422  ;;  %339 = vrot.lane.b32.xlu0 %v1251_v5, %s894_s0 }
 0x176   :  { %329 = vrot.lane.b32.xlu1 %v1264_v7, %s894_s0 }
 0x17b   :  { %574 = vrot.lane.b32.xlu2 %v1268_v49, %s897_s25 }
 0x17d   :  { %v496_v54 = vpop.permute.xlu2 %495  ;;  %345 = vrot.lane.b32.xlu0 %v301_v58, %s894_s0 }
 0x17e   :  { %402 = vrot.lane.b32.xlu1 %v1179_v20, %s895_s1 }
 0x17f   :  { %v480_v13 = vpop.permute.xlu0 %479 }
 0x180   :  { %v318_v6 = vpop.permute.xlu1 %317 }
 0x181   :  { %v349_v5 = vadd.f32 %v318_v6, %v1015_v1 }
 0x183   :  { %572 = vrot.lane.b32.xlu2 %v1272_v63, %s897_s25  ;;  %v430_v7 = vadd.f32 %v399_v44, %v349_v5  ;;  %v1633_v63 = vrot.slane %v1194_v37, 1  ;;  %v1634_v44 = vrot.slane %v1053_v14, 4 }
 0x185   :  { %v320_v49 = vpop.permute.xlu2 %319  ;;  %v511_v8 = vadd.f32 %v480_v13, %v430_v7  ;;  %418 = vrot.lane.b32.xlu0 %v386_v43, %s895_s1  ;;  %v305_v55 = vsel %vm300_vm2, %v292_v25, %v1633_v63 }
 0x186   :  { %493 = vrot.lane.b32.xlu1 %v1280_v36, %s896_s24 }
 0x187   :  { %v561_v20 = vpop.permute.xlu0 %560 }
 0x188   :  { %v488_v24 = vpop.permute.xlu1 %487  ;;  %v1463_v45 = vadd.f32 %v561_v20, %v511_v8 }
 0x189   :  { %v515_v1 = vadd.f32 %v488_v24, %v434_v9 }
 0x18b   :  { %337 = vrot.lane.b32.xlu2 %v305_v55, %s894_s0 }
 0x18d   :  { %v490_v19 = vpop.permute.xlu2 %489  ;;  %501 = vrot.lane.b32.xlu0 %v1255_v42, %s896_s24 }
 0x18e   :  { %564 = vrot.lane.b32.xlu1 %v1185_v17, %s897_s25 }
 0x18f   :  { %v334_v36 = vpop.permute.xlu0 %333 }
 0x190   :  { %v569_v60 = vpop.permute.xlu1 %568 }
 0x191   :  { %v596_v3 = vadd.f32 %v569_v60, %v515_v1 }
 0x193   :  { %428 = vrot.lane.b32.xlu2 %v1224_v29, %s895_s1  ;;  %v357_v29 = vadd.f32 %v334_v36, %v1056_v15 }
 0x195   :  { %v571_v16 = vpop.permute.xlu2 %570  ;;  %499 = vrot.lane.b32.xlu0 %v1285_v51, %s896_s24 }
 0x196   :  { %347 = vrot.lane.b32.xlu1 %v1232_v10, %s894_s0 }
 0x197   :  { %v577_v25 = vpop.permute.xlu0 %576 }
 0x198   :  { %v342_v18 = vpop.permute.xlu1 %341 }
 0x199   :  { %v361_v42 = vadd.f32 %v342_v18, %v1053_v14  ;;  %v1511_v14 = vld [vmem:[%s1599_s2] ss:$0 sm:$0xff]  ;;  %s898_s2 = smov [#allocation7]  }
 0x19a   :  { %s752_s28 = sshll.u32 %s898_s2, 4  ;;  %s753_s28 = int_to_ptr.vmem [resolvable:$true] %s752_s28 }
 0x19b   :  { %509 = vrot.lane.b32.xlu2 %v1238_v57, %s896_s24  ;;  %v442_v17 = vadd.f32 %v423_v32, %v361_v42  ;;  %v350_v57 = vadd.f32 %v320_v49, %v1024_v4 }
 0x19d   :  { %v344_v46 = vpop.permute.xlu2 %343  ;;  %580 = vrot.lane.b32.xlu0 %v1291_v34, %s897_s25 }
 0x19e   :  { %420 = vrot.lane.b32.xlu1 %v1299_v39, %s895_s1  ;;  %v362_v4 = vadd.f32 %v344_v46, %v1075_v22  ;;  %v616_v22 = vadd.f32 %v1511_v14, %v596_v3 }
 0x19f   :  { %v328_v51 = vpop.permute.xlu0 %327 }
 0x1a0   :  { %v415_v61 = vpop.permute.xlu1 %414  ;;  %v632_v5 = vmax.f32 %v616_v22, 0.0 }
 0x1a1   :  { %v438_v10 = vadd.f32 %v415_v61, %v357_v29 }
 0x1a3   :  { %507 = vrot.lane.b32.xlu2 %v1303_v26, %s896_s24  ;;  %v519_v53 = vadd.f32 %v496_v54, %v438_v10 }
 0x1a5   :  { %v417_v31 = vpop.permute.xlu2 %416  ;;  %v600_v47 = vadd.f32 %v577_v25, %v519_v53  ;;  %590 = vrot.lane.b32.xlu0 %v1309_v27, %s897_s25  ;;  %v547_v27 = vsel %vm543_vm5, %v538_v52, %v1634_v44 }
 0x1a6   :  { %426 = vrot.lane.b32.xlu1 %v1313_v50, %s895_s1  ;;  %v354_v50 = vadd.f32 %v328_v51, %v995_v59 }
 0x1a7   :  { %v401_v34 = vpop.permute.xlu0 %400  ;;  %v620_v29 = vadd.f32 %v1511_v14, %v600_v47 }
 0x1a8   :  { %v504_v39 = vpop.permute.xlu1 %503  ;;  %v431_v15 = vadd.f32 %v401_v34, %v350_v57 }
 0x1a9   :  { %v1495_v48 = vadd.f32 %v504_v39, %v442_v17  ;;  %v636_v34 = vmax.f32 %v620_v29, 0.0 }
 0x1ab   :  { %584 = vrot.lane.b32.xlu2 %v1100_v33, %s897_s25  ;;  %v1514_v33 = vadd.s32 8, %v991_v56 }
 0x1ad   :  { %v332_v26 = vpop.permute.xlu2 %331  ;;  %vm646_vm6 = vcmp.lt.s32.totalorder %v1514_v33, 12 }
 0x1ae   :  { %582 = vrot.lane.b32.xlu1 %v547_v27, %s897_s25  ;;  %v356_v17 = vadd.f32 %v332_v26, %v1218_v2 }
 0x1af   :  { %v425_v11 = vpop.permute.xlu0 %424 }
 0x1b0   :  { %v409_v35 = vpop.permute.xlu1 %408  ;;  %v443_v12 = vadd.f32 %v425_v11, %v362_v4 }
 0x1b1   :  { %v435_v9 = vadd.f32 %v409_v35, %v354_v50 }
 0x1b3   :  { %v516_v32 = vadd.f32 %v490_v19, %v435_v9 }
 0x1b5   :  { %v405_v52 = vpop.permute.xlu2 %404  ;;  %v597_v54 = vadd.f32 %v571_v16, %v516_v32 }
 0x1b6   :  { %588 = vrot.lane.b32.xlu1 %v1317_v62, %s897_s25  ;;  %v612_v62 = vadd.f32 %v1511_v14, %v1463_v45 }
 0x1b7   :  { %v617_v59 = vadd.f32 %v1511_v14, %v597_v54  ;;  %v498_v30 = vpop.permute.xlu0 %497 }
 0x1b8   :  { %v482_v58 = vpop.permute.xlu1 %481  ;;  %v628_v55 = vmax.f32 %v612_v62, 0.0 }
 0x1b9   :  { %v633_v13 = vmax.f32 %v617_v59, 0.0  ;;  %v512_v6 = vadd.f32 %v482_v58, %v431_v15 }
 0x1bb   :  { %v656_v56 = vsel %vm646_vm6, %v633_v13, 0.0 }
 0x1bc   :  { %v1523_v7 = vmax.f32 %v632_v5, %v656_v56 }
 0x1bd   :  { %v411_v49 = vpop.permute.xlu2 %410 }
 0x1bf   :  { %v579_v43 = vpop.permute.xlu0 %578 }
 0x1c0   :  { %v563_v8 = vpop.permute.xlu1 %562 }
 0x1c1   :  { %v593_v20 = vadd.f32 %v563_v8, %v512_v6 }
 0x1c3   :  { %v613_v24 = vadd.f32 %v1511_v14, %v593_v20 }
 0x1c5   :  { %v484_v1 = vpop.permute.xlu2 %483  ;;  %v629_v63 = vmax.f32 %v613_v24, 0.0 }
 0x1c7   :  { %v652_v19 = vsel %vm646_vm6, %v629_v63, 0.0  ;;  %v322_v36 = vpop.permute.xlu0 %321 }
 0x1c8   :  { %v1530_v60 = vmax.f32 %v628_v55, %v652_v19  ;;  %v336_v3 = vpop.permute.xlu1 %335 }
 0x1c9   :  { %v358_v16 = vadd.f32 %v336_v3, %v1077_v23  ;;  %v682_v3 = vrot.slane %v1523_v7, 4 }
 0x1ca   :  { %v668_v63 = vrot.slane %v1530_v60, 4 }
 0x1cb   :  { %v439_v25 = vadd.f32 %v417_v31, %v358_v16 }
 0x1cc   :  { %v669_v29 = vmax.f32 %v1530_v60, %v668_v63 }
 0x1cd   :  { %v567_v18 = vpop.permute.xlu2 %566  ;;  %v520_v42 = vadd.f32 %v498_v30, %v439_v25 }
 0x1cf   :  { %v601_v45 = vadd.f32 %v579_v43, %v520_v42  ;;  %v413_v46 = vpop.permute.xlu0 %412  ;;  %v351_v43 = vadd.f32 %v322_v36, %v1083_v28 }
 0x1d0   :  { %v506_v51 = vpop.permute.xlu1 %505  ;;  %v437_v61 = vadd.f32 %v413_v46, %v356_v17 }
 0x1d1   :  { %v621_v10 = vadd.f32 %v1511_v14, %v601_v45  ;;  %v524_v53 = vadd.f32 %v506_v51, %v443_v12 }
 0x1d3   :  { %v637_v57 = vmax.f32 %v621_v10, 0.0 }
 0x1d5   :  { %v575_v39 = vpop.permute.xlu2 %574  ;;  %v660_v23 = vsel %vm646_vm6, %v637_v57, 0.0 }
 0x1d6   :  { %v695_v31 = vmax.f32 %v636_v34, %v660_v23 }
 0x1d7   :  { %v486_v15 = vpop.permute.xlu0 %485 }
 0x1d8   :  { %v587_v44 = vpop.permute.xlu1 %586  ;;  %v696_v42 = vrot.slane %v695_v31, 4 }
 0x1d9   :  { %v605_v27 = vadd.f32 %v587_v44, %v524_v53  ;;  %v670_v44 = vrot.slane %v669_v29, 2 }
 0x1da   :  { %v697_v34 = vmax.f32 %v695_v31, %v696_v42 }
 0x1db   :  { %v625_v17 = vadd.f32 %v1511_v14, %v605_v27 }
 0x1dd   :  { %v573_v2 = vpop.permute.xlu2 %572 }
 0x1df   :  { %v492_v26 = vpop.permute.xlu0 %491 }
 0x1e0   :  { %v324_v4 = vpop.permute.xlu1 %323 }
 0x1e1   :  { %v352_v9 = vadd.f32 %v324_v4, %v1122_v41 }
 0x1e3   :  { %v433_v59 = vadd.f32 %v405_v52, %v352_v9 }
 0x1e5   :  { %v1538_v50 = vpop.permute.xlu2 %337  ;;  %v514_v13 = vadd.f32 %v486_v15, %v433_v59 }
 0x1e7   :  { %v1540_v47 = vpop.permute.xlu0 %339  ;;  %v595_v8 = vadd.f32 %v567_v18, %v514_v13 }
 0x1e8   :  { %v330_v11 = vpop.permute.xlu1 %329 }
 0x1e9   :  { %v355_v35 = vadd.f32 %v330_v11, %v1013_v0 }
 0x1eb   :  { %v436_v54 = vadd.f32 %v411_v49, %v355_v35  ;;  %v615_v49 = vadd.f32 %v1511_v14, %v595_v8  ;;  %v698_v35 = vrot.slane %v697_v34, 2 }
 0x1ed   :  { %v1543_v12 = vpop.permute.xlu2 %428  ;;  %v517_v30 = vadd.f32 %v492_v26, %v436_v54  ;;  %v631_v46 = vmax.f32 %v615_v49, 0.0 }
 0x1ef   :  { %v1546_v32 = vpop.permute.xlu0 %345  ;;  %v598_v5 = vadd.f32 %v573_v2, %v517_v30  ;;  %v654_v15 = vsel %vm646_vm6, %v631_v46, 0.0  ;;  %v360_v46 = vadd.f32 %v1540_v47, %v1194_v37 }
 0x1f0   :  { %v403_v22 = vpop.permute.xlu1 %402 }
 0x1f1   :  { %v432_v20 = vadd.f32 %v403_v22, %v351_v43  ;;  %v618_v41 = vadd.f32 %v1511_v14, %v598_v5  ;;  %v699_v5 = vmax.f32 %v697_v34, %v698_v35 }
 0x1f3   :  { %v513_v19 = vadd.f32 %v484_v1, %v432_v20  ;;  %v634_v16 = vmax.f32 %v618_v41, 0.0  ;;  %v683_v1 = vmax.f32 %v1523_v7, %v682_v3  ;;  %v700_v41 = vrot.slane %v699_v5, 1 }
 0x1f5   :  { %v1548_v58 = vpop.permute.xlu2 %509  ;;  %v684_v60 = vrot.slane %v683_v1, 2 }
 0x1f7   :  { %v1550_v6 = vpop.permute.xlu0 %418  ;;  %v685_v59 = vmax.f32 %v683_v1, %v684_v60 }
 0x1f8   :  { %v494_v56 = vpop.permute.xlu1 %493 }
 0x1f9   :  { %v518_v0 = vadd.f32 %v494_v56, %v437_v61 }
 0x1fb   :  { %v599_v62 = vadd.f32 %v575_v39, %v518_v0  ;;  %v641_v39 = vmax.f32 %v625_v17, 0.0  ;;  %v686_v0 = vrot.slane %v685_v59, 1 }
 0x1fd   :  { %v1554_v24 = vpop.permute.xlu2 %507  ;;  %v619_v52 = vadd.f32 %v1511_v14, %v599_v62  ;;  %v664_v9 = vsel %vm646_vm6, %v641_v39, 0.0  ;;  %v687_v63 = vmax.f32 %v685_v59, %v686_v0 }
 0x1ff   :  { %v635_v55 = vmax.f32 %v619_v52, 0.0  ;;  %v1562_v18 = vpop.permute.xlu0 %501 }
 0x200   :  { %v565_v28 = vpop.permute.xlu1 %564 }
 0x201   :  { %v658_v36 = vsel %vm646_vm6, %v635_v55, 0.0  ;;  %v594_v25 = vadd.f32 %v565_v28, %v513_v19 }
 0x202   :  { %v688_v45 = vmax.f32 %v634_v16, %v658_v36  ;;  %v701_v16 = vmax.f32 %v699_v5, %v700_v41 }
 0x203   :  { %v614_v51 = vadd.f32 %v1511_v14, %v594_v25  ;;  %v359_v25 = vadd.f32 %v1538_v50, %v1120_v40 }
 0x204   :  { %v689_v61 = vrot.slane %v688_v45, 4 }
 0x205   :  { %v585_v10 = vpop.permute.xlu2 %584  ;;  %v630_v53 = vmax.f32 %v614_v51, 0.0 }
 0x206   :  { %v604_v57 = vadd.f32 %v585_v10, %v1495_v48  ;;  %v690_v23 = vmax.f32 %v688_v45, %v689_v61  ;;  %v671_v48 = vmax.f32 %v669_v29, %v670_v44  ;;  %v440_v29 = vadd.f32 %v1550_v6, %v359_v25 }
 0x207   :  { %v674_v27 = vmax.f32 %v630_v53, %v654_v15  ;;  %v500_v22 = vpop.permute.xlu0 %499 }
 0x208   :  { %v624_v2 = vadd.f32 %v1511_v14, %v604_v57  ;;  %v348_v26 = vpop.permute.xlu1 %347  ;;  %v691_v4 = vrot.slane %v690_v23, 2  ;;  %v672_v56 = vrot.slane %v671_v48, 1  ;;  %v521_v61 = vadd.f32 %v500_v22, %v440_v29 }
 0x209   :  { %v675_v11 = vrot.slane %v674_v27, 4  ;;  %v364_v42 = vadd.f32 %v348_v26, %v1188_v21  ;;  %v363_v21 = vadd.f32 %v1546_v32, %v1117_v38 }
 0x20a   :  { %v640_v7 = vmax.f32 %v624_v2, 0.0  ;;  %v692_v30 = vmax.f32 %v690_v23, %v691_v4  ;;  %v673_v52 = vmax.f32 %v671_v48, %v672_v56 }
 0x20b   :  { %v676_v31 = vmax.f32 %v674_v27, %v675_v11  ;;  %v445_v1 = vadd.f32 %v1543_v12, %v364_v42 }
 0x20c   :  { %v709_v54 = vmax.f32 %v640_v7, %v664_v9  ;;  %v693_v20 = vrot.slane %v692_v30, 1 }
 0x20d   :  { %v677_v13 = vrot.slane %v676_v31, 2  ;;  %v526_v34 = vadd.f32 %v1548_v58, %v445_v1 }
 0x20e   :  { %v694_v55 = vmax.f32 %v692_v30, %v693_v20  ;;  %v710_v50 = vrot.slane %v709_v54, 4 }
 0x20f   :  { %v678_v43 = vmax.f32 %v676_v31, %v677_v13  ;;  %v581_v3 = vpop.permute.xlu0 %580 }
 0x210   :  { %v421_v8 = vpop.permute.xlu1 %420  ;;  %v602_v10 = vadd.f32 %v581_v3, %v521_v61  ;;  %v711_v12 = vmax.f32 %v709_v54, %v710_v50 }
 0x211   :  { %v679_v62 = vrot.slane %v678_v43, 1  ;;  %v441_v51 = vadd.f32 %v421_v8, %v360_v46 }
 0x212   :  { %v622_v37 = vadd.f32 %v1511_v14, %v602_v10  ;;  %v712_v32 = vrot.slane %v711_v12, 2 }
 0x213   :  { %v680_v49 = vmax.f32 %v678_v43, %v679_v62  ;;  %v522_v57 = vadd.f32 %v1562_v18, %v441_v51 }
 0x214   :  { %v638_v44 = vmax.f32 %v622_v37, 0.0  ;;  %v713_v35 = vmax.f32 %v711_v12, %v712_v32 }
 0x215   :  { %v732_v19 = vsel %vm731_vm7, %v680_v49, %v673_v52 }
 0x216   :  { %v734_v28 = vsel %vm733_vm8, %v687_v63, %v732_v19  ;;  %v714_v59 = vrot.slane %v713_v35, 1 }
 0x217   :  { %v736_v36 = vsel %vm735_vm9, %v694_v55, %v734_v28  ;;  %v591_v53 = vpop.permute.xlu0 %590 }
 0x218   :  { %v427_v17 = vpop.permute.xlu1 %426  ;;  %v738_v45 = vsel %vm737_vm10, %v701_v16, %v736_v36  ;;  %v607_v47 = vadd.f32 %v591_v53, %v526_v34  ;;  %v715_v56 = vmax.f32 %v713_v35, %v714_v59 }
 0x219   :  { %v444_v6 = vadd.f32 %v427_v17, %v363_v21 }
 0x21a   :  { %v627_v27 = vadd.f32 %v1511_v14, %v607_v47 }
 0x21b   :  { %v525_v18 = vadd.f32 %v1554_v24, %v444_v6 }
 0x21c   :  { %v643_v26 = vmax.f32 %v627_v27, 0.0 }
 0x21e   :  { %v666_v48 = vsel %vm646_vm6, %v643_v26, 0.0 }
 0x220   :  { %v583_v40 = vpop.permute.xlu1 %582 }
 0x221   :  { %v603_v39 = vadd.f32 %v583_v40, %v522_v57 }
 0x223   :  { %v623_v23 = vadd.f32 %v1511_v14, %v603_v39 }
 0x225   :  { %v639_v15 = vmax.f32 %v623_v23, 0.0 }
 0x227   :  { %v662_v58 = vsel %vm646_vm6, %v639_v15, 0.0 }
 0x228   :  { %v702_v2 = vmax.f32 %v638_v44, %v662_v58  ;;  %v589_v38 = vpop.permute.xlu1 %588 }
 0x229   :  { %v606_v60 = vadd.f32 %v589_v38, %v525_v18 }
 0x22a   :  { %v703_v4 = vrot.slane %v702_v2, 4 }
 0x22b   :  { %v626_v11 = vadd.f32 %v1511_v14, %v606_v60 }
 0x22c   :  { %v704_v7 = vmax.f32 %v702_v2, %v703_v4 }
 0x22d   :  { %v642_v9 = vmax.f32 %v626_v11, 0.0 }
 0x22e   :  { %v705_v31 = vrot.slane %v704_v7, 2 }
 0x22f   :  { %v716_v54 = vmax.f32 %v642_v9, %v666_v48 }
 0x230   :  { %v706_v22 = vmax.f32 %v704_v7, %v705_v31 }
 0x231   :  { %v717_v30 = vrot.slane %v716_v54, 4 }
 0x232   :  { %v707_v24 = vrot.slane %v706_v22, 1 }
 0x233   :  { %v718_v13 = vmax.f32 %v716_v54, %v717_v30 }
 0x234   :  { %v708_v5 = vmax.f32 %v706_v22, %v707_v24 }
 0x235   :  { %v719_v43 = vrot.slane %v718_v13, 2 }
 0x236   :  { %v740_v0 = vsel %vm739_vm11, %v708_v5, %v738_v45 }
 0x237   :  { %v720_v14 = vmax.f32 %v718_v13, %v719_v43  ;;  %v742_v8 = vsel %vm741_vm12, %v715_v56, %v740_v0 }
 0x239   :  { %v721_v20 = vrot.slane %v720_v14, 1 }
 0x23b   :  { %v722_v33 = vmax.f32 %v720_v14, %v721_v20 }
 0x23d   :  { %v744_v62 = vsel %vm743_vm13, %v722_v33, %v742_v8 }
 0x23e   :  { %746 = vst [vmem:[#allocation7] sm:$0xff] %v744_v62 }
 0x23f   :  { %757 = dma.vmem_to_hbm [thread:$0]  %s753_s28, 128, %s755_s4, [#allocation4]  }
 0x240   :  { %887 = dma.done.wait [#allocation4], 128  }
 0x241   :  { %888 = vsyncadd [#allocation4], 4294967168 }
 0x242   :  { %762 = vsyncpa [#allocation3], 1 }
 0x243   :  { %763 = vsyncpa [#allocation6], 1 }
 0x244   :  { %764 = vsyncpa [#allocation4], 1 }

</bundles_post_ra>
